<compile_context>
chip_gen: v5e
topology: v5e:2x2
jax: 0.10.0
libtpu: 0.0.40
codegen_flags: <defaults>
</compile_context>

<pallas_src>
import math
import jax
import jax.numpy as jnp
from jax.experimental import pallas as pl
from jax.experimental.pallas import tpu as pltpu

# ---------------- model hyperparameters (small, synthetic) ----------------
B = 2          # batch
N = 8          # sequence length
D_MODEL = 32   # d_model
N_HEAD = 4     # heads
D_HEAD = 8     # dim_head
INNER = N_HEAD * D_HEAD          # 32
FF_HIDDEN = D_MODEL * 4 * 2      # 256  (Linear(dim, dim*mult*2))
FF_INNER = D_MODEL * 4           # 128  (GEGLU halves the hidden dim)
SCALE = D_HEAD ** (-0.5)
BN = B * N                       # flattened token count
MASK_VALUE = -1e30               # bounded mask constant (every row keeps its diagonal)


def _gelu_exact(x):
    # matches torch.nn.functional.gelu (erf-based, default)
    return 0.5 * x * (1.0 + jax.lax.erf(x * (1.0 / math.sqrt(2.0))))


def feedback_layer_kernel(x_ref, wq_ref, wk_ref, wv_ref, wout_ref, bout_ref,
                          bias_ref, w1_ref, b1_ref, w2_ref, b2_ref, o_ref):
    # ---- Attention ----
    x_bf = x_ref[...].astype(jnp.bfloat16)                              # (BN, D)
    xb = jnp.broadcast_to(x_bf, (N_HEAD, BN, D_MODEL))                  # (H, BN, D)

    # head-batched projections; SCALE already folded into wq (no loop, no lane slices)
    q = jnp.einsum('hnd,hdk->hnk', xb, wq_ref[...],
                   preferred_element_type=jnp.float32)                  # (H, BN, dh)
    k = jnp.einsum('hnd,hdk->hnk', xb, wk_ref[...],
                   preferred_element_type=jnp.float32)                  # (H, BN, dh)
    v = jnp.einsum('hnd,hdk->hnk', xb, wv_ref[...],
                   preferred_element_type=jnp.float32)                  # (H, BN, dh)

    # one batched score matmul + ONE softmax covering every (head, batch) pair
    sim = jnp.einsum('hid,hjd->hij', q.astype(jnp.bfloat16), k.astype(jnp.bfloat16),
                     preferred_element_type=jnp.float32)                # (H, BN, BN)
    sim = sim + bias_ref[...]          # additive causal + same-batch block-diag mask
    sim = sim - jnp.max(sim, axis=-1, keepdims=True)
    p = jnp.exp(sim)
    p = p * pl.reciprocal(jnp.sum(p, axis=-1, keepdims=True), approx=True)

    o = jnp.einsum('hij,hjd->hid', p.astype(jnp.bfloat16), v.astype(jnp.bfloat16),
                   preferred_element_type=jnp.float32)                  # (H, BN, dh)

    # concat-free head merge: one batched contraction through Wout, then head-sum
    y = jnp.einsum('hid,hdm->him', o.astype(jnp.bfloat16), wout_ref[...],
                   preferred_element_type=jnp.float32)                  # (H, BN, D)
    y = jnp.sum(y, axis=0) + bout_ref[...]                              # (BN, D)

    # ---- FeedForward (GEGLU) ----
    h1 = jnp.dot(y.astype(jnp.bfloat16), w1_ref[...],
                 preferred_element_type=jnp.float32) + b1_ref[...]      # (BN, 8D)
    xh = h1[:, :FF_INNER]          # 128-lane aligned slices (clean vreg boundaries)
    gate = h1[:, FF_INNER:]
    g = _gelu_exact(gate) * xh                                          # (BN, 4D) f32
    out = jnp.dot(g.astype(jnp.bfloat16), w2_ref[...],
                  preferred_element_type=jnp.float32) + b2_ref[...]     # (BN, D)

    o_ref[...] = out.astype(o_ref.dtype)


def prepare_params(wq, wkv, wout, bout, w1, b1, w2, b2):
    """One-time offline weight transform (kept OUT of the jitted dispatch path)."""
    def head_major(w):  # (D, INNER) -> (H, D, dh), bf16
        return w.reshape(D_MODEL, N_HEAD, D_HEAD).transpose(1, 0, 2).astype(jnp.bfloat16)

    wq3 = head_major(wq * SCALE)                 # fold attention scale into the weight
    wk3 = head_major(wkv[:, :INNER])
    wv3 = head_major(wkv[:, INNER:])
    wout_h = wout.reshape(N_HEAD, D_HEAD, D_MODEL).astype(jnp.bfloat16)   # (H, dh, D)

    # additive attention bias on the flattened token axis:
    # causal within each sequence + block-diagonal across batches
    row = jnp.arange(BN)[:, None]
    col = jnp.arange(BN)[None, :]
    masked = ((row // N) != (col // N)) | ((col % N) > (row % N))
    attn_bias = jnp.where(masked, jnp.float32(MASK_VALUE), jnp.float32(0.0))  # (BN, BN)

    return (wq3, wk3, wv3, wout_h, bout.astype(jnp.float32), attn_bias,
            w1.astype(jnp.bfloat16), b1.astype(jnp.float32),
            w2.astype(jnp.bfloat16), b2.astype(jnp.float32))


@jax.jit
def feedback_layer(x, wq3, wk3, wv3, wout_h, bout, attn_bias, w1, b1, w2, b2):
    vmem = pl.BlockSpec(memory_space=pltpu.MemorySpace.VMEM)
    out_flat = pl.pallas_call(
        feedback_layer_kernel,
        out_shape=jax.ShapeDtypeStruct((BN, D_MODEL), x.dtype),
        in_specs=[vmem] * 11,
        out_specs=vmem,
    )(x.reshape(BN, D_MODEL), wq3, wk3, wv3, wout_h, bout, attn_bias,
      w1, b1, w2, b2)
    return out_flat.reshape(B, N, D_MODEL)


def reference(x, wq, wkv, wout, bout, w1, b1, w2, b2):
    # pure-JAX f32 reference of the same forward (sanity check)
    q = (x @ wq) * SCALE
    kv = x @ wkv
    k, v = kv[..., :INNER], kv[..., INNER:]

    def split_heads(t):
        return t.reshape(B, N, N_HEAD, D_HEAD).transpose(0, 2, 1, 3)

    qh, kh, vh = map(split_heads, (q, k, v))
    sim = jnp.einsum("bhid,bhjd->bhij", qh, kh)
    mask = jnp.triu(jnp.ones((N, N), bool), k=1)
    sim = jnp.where(mask[None, None], -jnp.finfo(jnp.float32).max, sim)
    attn = jax.nn.softmax(sim, axis=-1)
    o = jnp.einsum("bhij,bhjd->bhid", attn, vh)
    o = o.transpose(0, 2, 1, 3).reshape(B, N, INNER)
    y = o @ wout + bout
    h1 = y @ w1 + b1
    xh, gate = h1[..., :FF_INNER], h1[..., FF_INNER:]
    g = _gelu_exact(gate) * xh
    return g @ w2 + b2


if __name__ == "__main__":
    key = jax.random.PRNGKey(0)
    keys = jax.random.split(key, 10)

    x = jax.random.normal(keys[0], (B, N, D_MODEL), jnp.float32)

    # deterministic parameter init (synthetic; stored as (in, out))
    def init(k, shape, fan_in):
        bound = 1.0 / math.sqrt(fan_in)
        return jax.random.uniform(k, shape, jnp.float32, -bound, bound)

    wq = init(keys[1], (D_MODEL, INNER), D_MODEL)
    wkv = init(keys[2], (D_MODEL, 2 * INNER), D_MODEL)
    wout = init(keys[3], (INNER, D_MODEL), INNER)
    bout = init(keys[4], (1, D_MODEL), INNER)
    w1 = init(keys[5], (D_MODEL, FF_HIDDEN), D_MODEL)
    b1 = init(keys[6], (1, FF_HIDDEN), D_MODEL)
    w2 = init(keys[7], (FF_INNER, D_MODEL), FF_INNER)
    b2 = init(keys[8], (1, D_MODEL), FF_INNER)

    # one-time fused / bf16 / head-major weight prep (outside the jitted call path)
    params = prepare_params(wq, wkv, wout, bout, w1, b1, w2, b2)
    params = jax.tree_util.tree_map(jax.block_until_ready, params)

    out = feedback_layer(x, *params)
    out = jax.block_until_ready(out)

    ref = reference(x, wq, wkv, wout, bout, w1, b1, w2, b2)
    assert out.shape == (B, N, D_MODEL)
    # bf16 MXU operands (f32 accumulation) -> slightly looser tolerance vs f32 ref
    assert jnp.allclose(out, ref, rtol=3e-2, atol=3e-2), "mismatch vs reference"

    print("KERNEL_OK")
</pallas_src>

<mosaic_0001>
module attributes {stable_mosaic.version = 11 : i64} {
  func.func @feedback_layer_kernel(%arg0: memref<16x32xf32, #tpu.memory_space<vmem>>, %arg1: memref<4x32x8xbf16, #tpu.memory_space<vmem>>, %arg2: memref<4x32x8xbf16, #tpu.memory_space<vmem>>, %arg3: memref<4x32x8xbf16, #tpu.memory_space<vmem>>, %arg4: memref<4x8x32xbf16, #tpu.memory_space<vmem>>, %arg5: memref<1x32xf32, #tpu.memory_space<vmem>>, %arg6: memref<16x16xf32, #tpu.memory_space<vmem>>, %arg7: memref<32x256xbf16, #tpu.memory_space<vmem>>, %arg8: memref<1x256xf32, #tpu.memory_space<vmem>>, %arg9: memref<128x32xbf16, #tpu.memory_space<vmem>>, %arg10: memref<1x32xf32, #tpu.memory_space<vmem>>, %arg11: memref<16x32xf32, #tpu.memory_space<vmem>>) attributes {dimension_semantics = [], scalar_prefetch = 0 : i64, scratch_operands = 0 : i64, tpu.core_type = #tpu.core_type<tc>} {
    %c0 = arith.constant 0 : index
    %c0_0 = arith.constant 0 : index
    %0 = vector.load %arg0[%c0, %c0_0] : memref<16x32xf32, #tpu.memory_space<vmem>>, vector<16x32xf32>
    %1 = arith.truncf %0 : vector<16x32xf32> to vector<16x32xbf16>
    %2 = vector.shape_cast %1 : vector<16x32xbf16> to vector<1x16x32xbf16>
    %3 = vector.broadcast %2 : vector<1x16x32xbf16> to vector<4x16x32xbf16>
    %c0_1 = arith.constant 0 : index
    %c0_2 = arith.constant 0 : index
    %c0_3 = arith.constant 0 : index
    %4 = vector.load %arg1[%c0_1, %c0_2, %c0_3] : memref<4x32x8xbf16, #tpu.memory_space<vmem>>, vector<4x32x8xbf16>
    "tpu.trace_start"() <{level = 10 : i32, message = "hnd,hdk->hnk"}> : () -> ()
    %cst = arith.constant dense<0.000000e+00> : vector<4x16x8xf32>
    %5 = tpu.matmul %3, %4, %cst {dimension_numbers = #tpu.dot_dimension_numbers<[2], [1], [1], [2], [0, 0, 0, 1, 1, 2], [0], [0]>} : vector<4x16x32xbf16>, vector<4x32x8xbf16>, vector<4x16x8xf32> -> vector<4x16x8xf32>
    "tpu.trace_stop"() : () -> ()
    %c0_4 = arith.constant 0 : index
    %c0_5 = arith.constant 0 : index
    %c0_6 = arith.constant 0 : index
    %6 = vector.load %arg2[%c0_4, %c0_5, %c0_6] : memref<4x32x8xbf16, #tpu.memory_space<vmem>>, vector<4x32x8xbf16>
    "tpu.trace_start"() <{level = 10 : i32, message = "hnd,hdk->hnk"}> : () -> ()
    %cst_7 = arith.constant dense<0.000000e+00> : vector<4x16x8xf32>
    %7 = tpu.matmul %3, %6, %cst_7 {dimension_numbers = #tpu.dot_dimension_numbers<[2], [1], [1], [2], [0, 0, 0, 1, 1, 2], [0], [0]>} : vector<4x16x32xbf16>, vector<4x32x8xbf16>, vector<4x16x8xf32> -> vector<4x16x8xf32>
    "tpu.trace_stop"() : () -> ()
    %c0_8 = arith.constant 0 : index
    %c0_9 = arith.constant 0 : index
    %c0_10 = arith.constant 0 : index
    %8 = vector.load %arg3[%c0_8, %c0_9, %c0_10] : memref<4x32x8xbf16, #tpu.memory_space<vmem>>, vector<4x32x8xbf16>
    "tpu.trace_start"() <{level = 10 : i32, message = "hnd,hdk->hnk"}> : () -> ()
    %cst_11 = arith.constant dense<0.000000e+00> : vector<4x16x8xf32>
    %9 = tpu.matmul %3, %8, %cst_11 {dimension_numbers = #tpu.dot_dimension_numbers<[2], [1], [1], [2], [0, 0, 0, 1, 1, 2], [0], [0]>} : vector<4x16x32xbf16>, vector<4x32x8xbf16>, vector<4x16x8xf32> -> vector<4x16x8xf32>
    "tpu.trace_stop"() : () -> ()
    %10 = arith.truncf %5 : vector<4x16x8xf32> to vector<4x16x8xbf16>
    %11 = arith.truncf %7 : vector<4x16x8xf32> to vector<4x16x8xbf16>
    "tpu.trace_start"() <{level = 10 : i32, message = "hid,hjd->hij"}> : () -> ()
    %cst_12 = arith.constant dense<0.000000e+00> : vector<4x16x16xf32>
    %12 = tpu.matmul %10, %11, %cst_12 {dimension_numbers = #tpu.dot_dimension_numbers<[2], [2], [1], [1], [0, 0, 0, 1, 1, 1], [0], [0]>} : vector<4x16x8xbf16>, vector<4x16x8xbf16>, vector<4x16x16xf32> -> vector<4x16x16xf32>
    "tpu.trace_stop"() : () -> ()
    %c0_13 = arith.constant 0 : index
    %c0_14 = arith.constant 0 : index
    %13 = vector.load %arg6[%c0_13, %c0_14] : memref<16x16xf32, #tpu.memory_space<vmem>>, vector<16x16xf32>
    %14 = vector.shape_cast %13 : vector<16x16xf32> to vector<1x16x16xf32>
    %15 = vector.broadcast %14 : vector<1x16x16xf32> to vector<4x16x16xf32>
    %16 = arith.addf %12, %15 : vector<4x16x16xf32>
    %cst_15 = arith.constant dense<0xFF800000> : vector<4x16xf32>
    %17 = vector.multi_reduction <maximumf>, %16, %cst_15 [2] : vector<4x16x16xf32> to vector<4x16xf32>
    %18 = vector.shape_cast %17 : vector<4x16xf32> to vector<4x16x1xf32>
    %19 = vector.broadcast %18 : vector<4x16x1xf32> to vector<4x16x16xf32>
    %20 = arith.subf %16, %19 : vector<4x16x16xf32>
    %21 = math.exp %20 : vector<4x16x16xf32>
    %cst_16 = arith.constant dense<0.000000e+00> : vector<4x16xf32>
    %22 = vector.multi_reduction <add>, %21, %cst_16 [2] : vector<4x16x16xf32> to vector<4x16xf32>
    %23 = vector.shape_cast %22 : vector<4x16xf32> to vector<4x16x1xf32>
    %24 = tpu.reciprocal %23 {approx = true} : vector<4x16x1xf32> -> vector<4x16x1xf32>
    %25 = vector.broadcast %24 : vector<4x16x1xf32> to vector<4x16x16xf32>
    %26 = arith.mulf %21, %25 : vector<4x16x16xf32>
    %27 = arith.truncf %26 : vector<4x16x16xf32> to vector<4x16x16xbf16>
    %28 = arith.truncf %9 : vector<4x16x8xf32> to vector<4x16x8xbf16>
    "tpu.trace_start"() <{level = 10 : i32, message = "hij,hjd->hid"}> : () -> ()
    %cst_17 = arith.constant dense<0.000000e+00> : vector<4x16x8xf32>
    %29 = tpu.matmul %27, %28, %cst_17 {dimension_numbers = #tpu.dot_dimension_numbers<[2], [1], [1], [2], [0, 0, 0, 1, 1, 2], [0], [0]>} : vector<4x16x16xbf16>, vector<4x16x8xbf16>, vector<4x16x8xf32> -> vector<4x16x8xf32>
    "tpu.trace_stop"() : () -> ()
    %30 = arith.truncf %29 : vector<4x16x8xf32> to vector<4x16x8xbf16>
    %c0_18 = arith.constant 0 : index
    %c0_19 = arith.constant 0 : index
    %c0_20 = arith.constant 0 : index
    %31 = vector.load %arg4[%c0_18, %c0_19, %c0_20] : memref<4x8x32xbf16, #tpu.memory_space<vmem>>, vector<4x8x32xbf16>
    "tpu.trace_start"() <{level = 10 : i32, message = "hid,hdm->him"}> : () -> ()
    %cst_21 = arith.constant dense<0.000000e+00> : vector<4x16x32xf32>
    %32 = tpu.matmul %30, %31, %cst_21 {dimension_numbers = #tpu.dot_dimension_numbers<[2], [1], [1], [2], [0, 0, 0, 1, 1, 2], [0], [0]>} : vector<4x16x8xbf16>, vector<4x8x32xbf16>, vector<4x16x32xf32> -> vector<4x16x32xf32>
    "tpu.trace_stop"() : () -> ()
    %cst_22 = arith.constant dense<0.000000e+00> : vector<16x32xf32>
    %33 = vector.multi_reduction <add>, %32, %cst_22 [0] : vector<4x16x32xf32> to vector<16x32xf32>
    %c0_23 = arith.constant 0 : index
    %c0_24 = arith.constant 0 : index
    %34 = vector.load %arg5[%c0_23, %c0_24] : memref<1x32xf32, #tpu.memory_space<vmem>>, vector<1x32xf32>
    %35 = vector.broadcast %34 : vector<1x32xf32> to vector<16x32xf32>
    %36 = arith.addf %33, %35 : vector<16x32xf32>
    %37 = arith.truncf %36 : vector<16x32xf32> to vector<16x32xbf16>
    %c0_25 = arith.constant 0 : index
    %c0_26 = arith.constant 0 : index
    %38 = vector.load %arg7[%c0_25, %c0_26] : memref<32x256xbf16, #tpu.memory_space<vmem>>, vector<32x256xbf16>
    %cst_27 = arith.constant dense<0.000000e+00> : vector<16x256xf32>
    %39 = tpu.matmul %37, %38, %cst_27 {dimension_numbers = #tpu.dot_dimension_numbers<[1], [0], [0], [1], [0, 0, 1, 1], [], []>} : vector<16x32xbf16>, vector<32x256xbf16>, vector<16x256xf32> -> vector<16x256xf32>
    %c0_28 = arith.constant 0 : index
    %c0_29 = arith.constant 0 : index
    %40 = vector.load %arg8[%c0_28, %c0_29] : memref<1x256xf32, #tpu.memory_space<vmem>>, vector<1x256xf32>
    %41 = vector.broadcast %40 : vector<1x256xf32> to vector<16x256xf32>
    %42 = arith.addf %39, %41 : vector<16x256xf32>
    %43 = vector.extract_strided_slice %42 {offsets = [0, 0], sizes = [16, 128], strides = [1, 1]} : vector<16x256xf32> to vector<16x128xf32>
    %44 = vector.extract_strided_slice %42 {offsets = [0, 128], sizes = [16, 128], strides = [1, 1]} : vector<16x256xf32> to vector<16x128xf32>
    %cst_30 = arith.constant 5.000000e-01 : f32
    %45 = vector.broadcast %cst_30 : f32 to vector<16x128xf32>
    %46 = arith.mulf %45, %44 : vector<16x128xf32>
    %cst_31 = arith.constant 0.707106769 : f32
    %47 = vector.broadcast %cst_31 : f32 to vector<16x128xf32>
    %48 = arith.mulf %44, %47 : vector<16x128xf32>
    %49 = math.erf %48 : vector<16x128xf32>
    %cst_32 = arith.constant 1.000000e+00 : f32
    %50 = vector.broadcast %cst_32 : f32 to vector<16x128xf32>
    %51 = arith.addf %50, %49 : vector<16x128xf32>
    %52 = arith.mulf %46, %51 : vector<16x128xf32>
    %53 = arith.mulf %52, %43 : vector<16x128xf32>
    %54 = arith.truncf %53 : vector<16x128xf32> to vector<16x128xbf16>
    %c0_33 = arith.constant 0 : index
    %c0_34 = arith.constant 0 : index
    %55 = vector.load %arg9[%c0_33, %c0_34] : memref<128x32xbf16, #tpu.memory_space<vmem>>, vector<128x32xbf16>
    %cst_35 = arith.constant dense<0.000000e+00> : vector<16x32xf32>
    %56 = tpu.matmul %54, %55, %cst_35 {dimension_numbers = #tpu.dot_dimension_numbers<[1], [0], [0], [1], [0, 0, 1, 1], [], []>} : vector<16x128xbf16>, vector<128x32xbf16>, vector<16x32xf32> -> vector<16x32xf32>
    %c0_36 = arith.constant 0 : index
    %c0_37 = arith.constant 0 : index
    %57 = vector.load %arg10[%c0_36, %c0_37] : memref<1x32xf32, #tpu.memory_space<vmem>>, vector<1x32xf32>
    %58 = vector.broadcast %57 : vector<1x32xf32> to vector<16x32xf32>
    %59 = arith.addf %56, %58 : vector<16x32xf32>
    %c0_38 = arith.constant 0 : index
    %c0_39 = arith.constant 0 : index
    %60 = vector.load %arg11[%c0_38, %c0_39] : memref<16x32xf32, #tpu.memory_space<vmem>>, vector<16x32xf32>
    tpu.vector_store %arg11[%c0_38, %c0_39], %59 {strides = array<i32>} : memref<16x32xf32, #tpu.memory_space<vmem>>, vector<16x32xf32>,
    return
  }
}

</mosaic_0001>

<bundles_post_ra>
// kernel: feedback_layer.1
= control target key start
LH: loop header
LB: loop body
LE: loop exit
PB: predicated region body
PF: predicated region fallthrough
CT: control target
= control target key end

     0   :  { %s1733_s0 = inlined_call_operand.vmem [shape: f32[16,32], index: 0, kind: input, shape index: {}]   ;;  %s1734_s1 = inlined_call_operand.vmem [shape: bf16[4,32,8], index: 1, kind: input, shape index: {}]   ;;  %s1735_s2 = inlined_call_operand.vmem [shape: bf16[4,32,8], index: 2, kind: input, shape index: {}]   ;;  %s1736_s3 = inlined_call_operand.vmem [shape: bf16[4,32,8], index: 3, kind: input, shape index: {}]   ;;  %s1737_s4 = inlined_call_operand.vmem [shape: bf16[4,8,32], index: 4, kind: input, shape index: {}]   ;;  %s1738_s5 = inlined_call_operand.vmem [shape: f32[1,32], index: 5, kind: input, shape index: {}]   ;;  %s1739_s6 = inlined_call_operand.vmem [shape: f32[16,16], index: 6, kind: input, shape index: {}]   ;;  %s1740_s7 = inlined_call_operand.vmem [shape: bf16[32,256], index: 7, kind: input, shape index: {}]   ;;  %s1741_s8 = inlined_call_operand.vmem [shape: f32[1,256], index: 8, kind: input, shape index: {}]   ;;  %s1742_s9 = inlined_call_operand.vmem [shape: bf16[128,32], index: 9, kind: input, shape index: {}]   ;;  %s1743_s10 = inlined_call_operand.vmem [shape: f32[1,32], index: 10, kind: input, shape index: {}]   ;;  %s1744_s11 = inlined_call_operand.hbm [shape: f32[16,32], index: 11, kind: output, shape index: {}]  }
   0x1   :  { %v1330_v0 = vld [vmem:[%s1734_s1 + $0x8] sm:$0xff]  ;;  %v1332_v1 = vld [vmem:[%s1734_s1 + $0x18] sm:$0xff]  ;;  %v1329_v4 = vld [vmem:[%s1734_s1] sm:$0xff] }
   0x2   :  { %v1334_v2 = vld [vmem:[%s1734_s1 + $0x28] sm:$0xff]  ;;  %87 = vmatpush.bf16.msra.mxu0 %v1330_v0  ;;  %113 = vmatpush.bf16.msra.mxu1 %v1332_v1  ;;  %v1331_v5 = vld [vmem:[%s1734_s1 + $0x10] sm:$0xff]  ;;  %v40_v6 = vld [vmem:[%s1733_s0] sm:$0xff] }
   0x3   :  { %v1342_v3 = vld [vmem:[%s1735_s2 + $0x28] sm:$0xff]  ;;  %139 = vmatpush.bf16.msra.mxu3 %v1334_v2  ;;  %v1333_v7 = vld [vmem:[%s1734_s1 + $0x20] sm:$0xff]  ;;  %v42_v10 = vpack.c.bf16 %v40_v6, %v40_v6  ;;  %v1336_v12 = vld [vmem:[%s1734_s1 + $0x38] sm:$0xff] }
   0x4   :  { %259 = vmatpush.bf16.msra.mxu2 %v1342_v3  ;;  %v1341_v8 = vld [vmem:[%s1735_s2 + $0x20] sm:$0xff]  ;;  %v41_v9 = vld [vmem:[%s1733_s0 + $0x8] sm:$0xff]  ;;  %v1340_v15 = vld [vmem:[%s1735_s2 + $0x18] sm:$0xff] }
   0x5   :  { %v43_v11 = vpack.c.bf16 %v41_v9, %v41_v9  ;;  %v1338_v13 = vld [vmem:[%s1735_s2 + $0x8] sm:$0xff]  ;;  %v62_v14 = vunpack.c.l.b16 %v42_v10 }
   0x6   :  { %88 = vmatpush.bf16.msra.mxu0 %v1329_v4  ;;  %114 = vmatpush.bf16.msra.mxu1 %v1331_v5 }
   0x7   :  { %v63_v16 = vunpack.c.l.b16 %v43_v11 }
   0x8   :  { %16 = vsyncpa [#allocation3], 0  ;;  %140 = vmatpush.bf16.msra.mxu3 %v1333_v7  ;;  %260 = vmatpush.bf16.msra.mxu2 %v1341_v8  ;;  %vm77_vm0 = vcmask 261120   ;;  %v1335_v18 = vld [vmem:[%s1734_s1 + $0x30] sm:$0xff]  ;;  %v1337_v19 = vld [vmem:[%s1735_s2] sm:$0xff]  ;;  %vm441_vm1 = vcmask 64512  }
   0x9   :  { %v64_v17 = vpack.c.b16 %v63_v16, %v62_v14  ;;  %v1339_v20 = vld [vmem:[%s1735_s2 + $0x10] sm:$0xff]  ;;  %v1344_v21 = vld [vmem:[%s1735_s2 + $0x38] sm:$0xff]  ;;  %v1350_v23 = vld [vmem:[%s1736_s3 + $0x28] sm:$0xff]  ;;  %vm552_vm2 = vcmask 130048   ;;  %vm789_vm3 = vcmask 1043456   ;;  %s1432_s0 = smov [#allocation2]  }
   0xa   :  { %207 = vmatpush.bf16.msrb.mxu0 %v1338_v13  ;;  %233 = vmatpush.bf16.msrb.mxu1 %v1340_v15  ;;  %v1343_v22 = vld [vmem:[%s1735_s2 + $0x30] sm:$0xff]  ;;  %v1349_v24 = vld [vmem:[%s1736_s3 + $0x20] sm:$0xff]  ;;  %v1346_v25 = vld [vmem:[%s1736_s3 + $0x8] sm:$0xff]  ;;  %s1143_s24 = sshll.u32 %s1432_s0, 4  ;;  %s1433_s27 = smov 128   ;;  %s1144_s24 = int_to_ptr.vmem [resolvable:$true] %s1143_s24 }
   0xb   :  { %1165 = vmatmul.msk.bf16.vlgmr.msra.gmra.mxu0 %vm77_vm0, %v64_v17  ;;  %1174 = vmatmul.msk.bf16.vlgmr.msra.gmra.mxu1 %vm77_vm0, %v64_v17  ;;  %v1348_v26 = vld [vmem:[%s1736_s3 + $0x18] sm:$0xff]  ;;  %v1345_v27 = vld [vmem:[%s1736_s3] sm:$0xff]  ;;  %v1347_v28 = vld [vmem:[%s1736_s3 + $0x10] sm:$0xff]  ;;  %s1434_s28 = smov 8  }
   0xc   :  { %165 = vmatpush.bf16.msrb.mxu3 %v1336_v12  ;;  %1219 = vmatmul.msk.bf16.vlgmr.msra.gmra.mxu2 %vm77_vm0, %v64_v17  ;;  %v1352_v29 = vld [vmem:[%s1736_s3 + $0x38] sm:$0xff]  ;;  %v1351_v32 = vld [vmem:[%s1736_s3 + $0x30] sm:$0xff]  ;;  %s1145_s3 = sshll.u32 %s1744_s11, 4  ;;  %s1146_s3 = int_to_ptr.hbm [resolvable:$true] %s1145_s3 }
   0xd   :  { %1183 = vmatmul.msk.bf16.vlgmr.msra.gmra.mxu3 %vm77_vm0, %v64_v17  ;;  %379 = vmatpush.bf16.msrb.mxu2 %v1350_v23 }
   0xe   :  { %208 = vmatpush.bf16.msrb.mxu0 %v1337_v19  ;;  %234 = vmatpush.bf16.msrb.mxu1 %v1339_v20 }
  0x10   :  { %166 = vmatpush.bf16.msrb.mxu3 %v1335_v18 }
  0x11   :  { %380 = vmatpush.bf16.msrb.mxu2 %v1349_v24 }
  0x12   :  { %327 = vmatpush.bf16.msra.mxu0 %v1346_v25  ;;  %353 = vmatpush.bf16.msra.mxu1 %v1348_v26 }
  0x14   :  { %285 = vmatpush.bf16.msra.mxu3 %v1344_v21 }
  0x16   :  { %328 = vmatpush.bf16.msra.mxu0 %v1345_v27  ;;  %354 = vmatpush.bf16.msra.mxu1 %v1347_v28 }
  0x18   :  { %286 = vmatpush.bf16.msra.mxu3 %v1343_v22 }
  0x1b   :  { %1201 = vmatmul.msk.bf16.vlgmr.msrb.gmra.mxu0 %vm77_vm0, %v64_v17  ;;  %1210 = vmatmul.msk.bf16.vlgmr.msrb.gmra.mxu1 %vm77_vm0, %v64_v17 }
  0x1c   :  { %1255 = vmatmul.msk.bf16.vlgmr.msrb.gmra.mxu2 %vm77_vm0, %v64_v17 }
  0x1d   :  { %1192 = vmatmul.msk.bf16.vlgmr.msrb.gmra.mxu3 %vm77_vm0, %v64_v17 }
  0x1e   :  { %405 = vmatpush.bf16.msrb.mxu3 %v1352_v29 }
  0x22   :  { %406 = vmatpush.bf16.msrb.mxu3 %v1351_v32 }
  0x2b   :  { %1237 = vmatmul.msk.bf16.vlgmr.msra.gmra.mxu0 %vm77_vm0, %v64_v17  ;;  %1246 = vmatmul.msk.bf16.vlgmr.msra.gmra.mxu1 %vm77_vm0, %v64_v17 }
  0x2d   :  { %1228 = vmatmul.msk.bf16.vlgmr.msra.gmra.mxu3 %vm77_vm0, %v64_v17 }
  0x3d   :  { %1264 = vmatmul.msk.bf16.vlgmr.msrb.gmra.mxu3 %vm77_vm0, %v64_v17 }
  0x88   :  { %v90_v30 = vpop.f32.mrf.mxu0  ;;  %v116_v31 = vpop.f32.mrf.mxu1 }
  0x89   :  { %v413_v59 = vpack.c.bf16 %v90_v30, %v90_v30  ;;  %v415_v60 = vpack.c.bf16 %v116_v31, %v116_v31 }
  0x8b   :  { %v433_v5 = vunpack.c.l.b16 %v413_v59  ;;  %v464_v6 = vunpack.c.l.b16 %v415_v60 }
  0x8f   :  { %v262_v34 = vpop.f32.mrf.mxu2 }
  0x90   :  { %v142_v33 = vpop.f32.mrf.mxu3  ;;  %v92_v35 = vpop.f32.mrf.mxu0  ;;  %v425_v37 = vpack.c.bf16 %v262_v34, %v262_v34 }
  0x91   :  { %v118_v36 = vpop.f32.mrf.mxu1  ;;  %v417_v49 = vpack.c.bf16 %v142_v33, %v142_v33  ;;  %v414_v62 = vpack.c.bf16 %v92_v35, %v92_v35 }
  0x92   :  { %v499_v40 = vunpack.c.l.b16 %v425_v37  ;;  %v416_v63 = vpack.c.bf16 %v118_v36, %v118_v36 }
  0x93   :  { %v494_v61 = vunpack.c.l.b16 %v417_v49  ;;  %v434_v7 = vunpack.c.l.b16 %v414_v62 }
  0x94   :  { %v465_v8 = vunpack.c.l.b16 %v416_v63 }
  0x95   :  { %v435_v12 = vpack.c.b16 %v434_v7, %v433_v5 }
  0x96   :  { %v466_v13 = vpack.c.b16 %v465_v8, %v464_v6 }
  0x97   :  { %v264_v39 = vpop.f32.mrf.mxu2 }
  0x98   :  { %v144_v38 = vpop.f32.mrf.mxu3  ;;  %v426_v41 = vpack.c.bf16 %v264_v39, %v264_v39  ;;  %v210_v42 = vpop.f32.mrf.mxu0 }
  0x99   :  { %v236_v43 = vpop.f32.mrf.mxu1  ;;  %v418_v45 = vpack.c.bf16 %v144_v38, %v144_v38  ;;  %v421_v47 = vpack.c.bf16 %v210_v42, %v210_v42 }
  0x9a   :  { %v500_v44 = vunpack.c.l.b16 %v426_v41  ;;  %v423_v48 = vpack.c.bf16 %v236_v43, %v236_v43 }
  0x9b   :  { %v495_v52 = vunpack.c.l.b16 %v418_v45  ;;  %v438_v55 = vunpack.c.l.b16 %v421_v47 }
  0x9c   :  { %v501_v46 = vpack.c.b16 %v500_v44, %v499_v40  ;;  %v469_v56 = vunpack.c.l.b16 %v423_v48 }
  0x9d   :  { %v496_v2 = vpack.c.b16 %v495_v52, %v494_v61  ;;  %v430_v61 = vld [vmem:[%s1739_s6 + $0x8] sm:$0xff] }
  0x9e   :  { %v506_v50 = vsel %vm441_vm1, %v501_v46, 0 }
  0x9f   :  { %515 = vmatpush.bf16.xpose.msra.mxu2 %v506_v50  ;;  %v382_v27 = vpop.f32.mrf.mxu2 }
  0xa0   :  { %v168_v51 = vpop.f32.mrf.mxu3  ;;  %v212_v53 = vpop.f32.mrf.mxu0  ;;  %v653_v30 = vpack.c.bf16 %v382_v27, %v382_v27 }
  0xa1   :  { %v238_v54 = vpop.f32.mrf.mxu1  ;;  %v422_v57 = vpack.c.bf16 %v212_v53, %v212_v53  ;;  %v419_v22 = vpack.c.bf16 %v168_v51, %v168_v51 }
  0xa2   :  { %v424_v58 = vpack.c.bf16 %v238_v54, %v238_v54  ;;  %v720_v33 = vunpack.c.l.b16 %v653_v30 }
  0xa3   :  { %v439_v0 = vunpack.c.l.b16 %v422_v57  ;;  %v524_v25 = vunpack.c.l.b16 %v419_v22 }
  0xa4   :  { %v470_v1 = vunpack.c.l.b16 %v424_v58 }
  0xa5   :  { %v440_v3 = vpack.c.b16 %v439_v0, %v438_v55  ;;  %v429_v55 = vld [vmem:[%s1739_s6] sm:$0xff] }
  0xa6   :  { %v471_v4 = vpack.c.b16 %v470_v1, %v469_v56  ;;  %1267 = vmatmul.msk.bf16.vlgmr.msra.gmra.mxu2 %vm441_vm1, %v496_v2 }
  0xa7   :  { %v446_v10 = vsel %vm441_vm1, %v440_v3, 0  ;;  %v384_v32 = vpop.f32.mrf.mxu2 }
  0xa8   :  { %v170_v9 = vpop.f32.mrf.mxu3  ;;  %v476_v11 = vsel %vm441_vm1, %v471_v4, 0  ;;  %455 = vmatpush.bf16.xpose.msrb.mxu0 %v446_v10  ;;  %v330_v28 = vpop.f32.mrf.mxu0  ;;  %v654_v35 = vpack.c.bf16 %v384_v32, %v384_v32 }
  0xa9   :  { %485 = vmatpush.bf16.xpose.msrb.mxu1 %v476_v11  ;;  %v420_v20 = vpack.c.bf16 %v170_v9, %v170_v9  ;;  %v356_v29 = vpop.f32.mrf.mxu1  ;;  %v649_v31 = vpack.c.bf16 %v330_v28, %v330_v28 }
  0xaa   :  { %v651_v34 = vpack.c.bf16 %v356_v29, %v356_v29  ;;  %v721_v36 = vunpack.c.l.b16 %v654_v35 }
  0xab   :  { %v525_v24 = vunpack.c.l.b16 %v420_v20  ;;  %v664_v37 = vunpack.c.l.b16 %v649_v31 }
  0xac   :  { %v692_v40 = vunpack.c.l.b16 %v651_v34  ;;  %v722_v41 = vpack.c.b16 %v721_v36, %v720_v33 }
  0xad   :  { %v526_v26 = vpack.c.b16 %v525_v24, %v524_v25 }
  0xae   :  { %734 = vmatpush.bf16.msrb.mxu2 %v722_v41 }
  0xaf   :  { %1265 = vmatmul.msk.bf16.vlgmr.msrb.gmra.mxu0 %vm441_vm1, %v435_v12 }
  0xb0   :  { %v288_v14 = vpop.f32.mrf.mxu3  ;;  %1266 = vmatmul.msk.bf16.vlgmr.msrb.gmra.mxu1 %vm441_vm1, %v466_v13  ;;  %v332_v38 = vpop.f32.mrf.mxu0 }
  0xb1   :  { %v427_v15 = vpack.c.bf16 %v288_v14, %v288_v14  ;;  %v358_v39 = vpop.f32.mrf.mxu1  ;;  %v650_v42 = vpack.c.bf16 %v332_v38, %v332_v38 }
  0xb2   :  { %v652_v43 = vpack.c.bf16 %v358_v39, %v358_v39 }
  0xb3   :  { %v529_v18 = vunpack.c.l.b16 %v427_v15  ;;  %v665_v44 = vunpack.c.l.b16 %v650_v42 }
  0xb4   :  { %v693_v45 = vunpack.c.l.b16 %v652_v43 }
  0xb5   :  { %v666_v46 = vpack.c.b16 %v665_v44, %v664_v37 }
  0xb6   :  { %v694_v47 = vpack.c.b16 %v693_v45, %v692_v40 }
  0xb7   :  { %678 = vmatpush.bf16.msra.mxu0 %v666_v46 }
  0xb8   :  { %v290_v16 = vpop.f32.mrf.mxu3  ;;  %706 = vmatpush.bf16.msra.mxu1 %v694_v47 }
  0xb9   :  { %v428_v17 = vpack.c.bf16 %v290_v16, %v290_v16 }
  0xbb   :  { %v530_v19 = vunpack.c.l.b16 %v428_v17 }
  0xbd   :  { %v531_v21 = vpack.c.b16 %v530_v19, %v529_v18 }
  0xbf   :  { %v536_v23 = vsel %vm441_vm1, %v531_v21, 0 }
  0xc0   :  { %545 = vmatpush.bf16.xpose.msra.mxu3 %v536_v23  ;;  %v408_v48 = vpop.f32.mrf.mxu3 }
  0xc1   :  { %v655_v49 = vpack.c.bf16 %v408_v48, %v408_v48 }
  0xc3   :  { %v748_v51 = vunpack.c.l.b16 %v655_v49 }
  0xc7   :  { %1268 = vmatmul.msk.bf16.vlgmr.msra.gmra.mxu3 %vm441_vm1, %v526_v26 }
  0xc8   :  { %v410_v50 = vpop.f32.mrf.mxu3 }
  0xc9   :  { %v656_v52 = vpack.c.bf16 %v410_v50, %v410_v50 }
  0xcb   :  { %v749_v53 = vunpack.c.l.b16 %v656_v52 }
  0xcd   :  { %v750_v54 = vpack.c.b16 %v749_v53, %v748_v51 }
  0xcf   :  { %762 = vmatpush.bf16.msrb.mxu3 %v750_v54 }
 0x129   :  { %v517_v56 = vpop.f32.mrf.mxu2 }
 0x12a   :  { %v518_v57 = vadd.f32 %v517_v56, %v429_v55 }
 0x12c   :  { %v565_v58 = vsel %vm552_vm2, %v518_v57, -inf  ;;  %v457_v59 = vpop.f32.mrf.mxu0 }
 0x12d   :  { %566 = vmax.xlane.f32.xlu0 %v565_v58  ;;  %v458_v60 = vadd.f32 %v457_v59, %v429_v55  ;;  %v487_v4 = vpop.f32.mrf.mxu1 }
 0x12e   :  { %v488_v6 = vadd.f32 %v487_v4, %v429_v55 }
 0x12f   :  { %v553_v62 = vsel %vm552_vm2, %v458_v60, -inf }
 0x130   :  { %554 = vmax.xlane.f32.xlu2 %v553_v62  ;;  %v559_v7 = vsel %vm552_vm2, %v488_v6, -inf }
 0x131   :  { %v519_v63 = vpop.f32.mrf.mxu2 }
 0x132   :  { %v520_v0 = vadd.f32 %v519_v63, %v430_v61 }
 0x134   :  { %v568_v1 = vsel %vm552_vm2, %v520_v0, -inf  ;;  %v459_v2 = vpop.f32.mrf.mxu0 }
 0x135   :  { %569 = vmax.xlane.f32.xlu0 %v568_v1  ;;  %v460_v3 = vadd.f32 %v459_v2, %v430_v61  ;;  %v489_v14 = vpop.f32.mrf.mxu1 }
 0x136   :  { %v490_v15 = vadd.f32 %v489_v14, %v430_v61 }
 0x137   :  { %v556_v5 = vsel %vm552_vm2, %v460_v3, -inf }
 0x138   :  { %557 = vmax.xlane.f32.xlu2 %v556_v5  ;;  %v562_v16 = vsel %vm552_vm2, %v490_v15, -inf }
 0x13d   :  { %560 = vmax.xlane.f32.xlu0 %v559_v7 }
 0x14a   :  { %v547_v8 = vpop.f32.mrf.mxu3 }
 0x14b   :  { %v548_v9 = vadd.f32 %v547_v8, %v429_v55 }
 0x14d   :  { %v571_v10 = vsel %vm552_vm2, %v548_v9, -inf }
 0x14e   :  { %572 = vmax.xlane.f32.xlu1 %v571_v10 }
 0x152   :  { %v549_v11 = vpop.f32.mrf.mxu3 }
 0x153   :  { %v550_v12 = vadd.f32 %v549_v11, %v430_v61 }
 0x155   :  { %v574_v13 = vsel %vm552_vm2, %v550_v12, -inf }
 0x156   :  { %575 = vmax.xlane.f32.xlu1 %v574_v13 }
 0x15e   :  { %563 = vmax.xlane.f32.xlu1 %v562_v16 }
 0x1a0   :  { %v567_v17 = vpop.xlane.xlu0 %566 }
 0x1a1   :  { %v581_v18 = vsub.f32 %v518_v57, %v567_v17 }
 0x1a3   :  { %v593_v19 = vmul.f32 1.442695, %v581_v18  ;;  %v555_v20 = vpop.xlane.xlu2 %554 }
 0x1a4   :  { %v577_v24 = vsub.f32 %v458_v60, %v555_v20 }
 0x1a5   :  { %1370 = vpow2.f32 %v593_v19 }
 0x1a6   :  { %v585_v27 = vmul.f32 1.442695, %v577_v24 }
 0x1a8   :  { %v570_v21 = vpop.xlane.xlu0 %569 }
 0x1a9   :  { %v582_v22 = vsub.f32 %v520_v0, %v570_v21 }
 0x1ab   :  { %v1371_v23 = vpop.eup %1370  ;;  %v595_v25 = vmul.f32 1.442695, %v582_v22  ;;  %v558_v32 = vpop.xlane.xlu2 %557 }
 0x1ac   :  { %v613_v26 = vsel %vm552_vm2, %v1371_v23, 0.0  ;;  %v578_v35 = vsub.f32 %v460_v3, %v558_v32 }
 0x1ad   :  { %1372 = vpow2.f32 %v595_v25  ;;  %614 = vadd.xlane.f32.xlu2 %v613_v26 }
 0x1ae   :  { %1374 = vpow2.f32 %v585_v27  ;;  %v587_v37 = vmul.f32 1.442695, %v578_v35 }
 0x1b0   :  { %v561_v38 = vpop.xlane.xlu0 %560 }
 0x1b1   :  { %v579_v42 = vsub.f32 %v488_v6, %v561_v38 }
 0x1b3   :  { %v1373_v28 = vpop.eup %1372  ;;  %v589_v45 = vmul.f32 1.442695, %v579_v42 }
 0x1b4   :  { %v616_v29 = vsel %vm552_vm2, %v1373_v28, 0.0  ;;  %v1375_v30 = vpop.eup %1374 }
 0x1b5   :  { %617 = vadd.xlane.f32.xlu0 %v616_v29  ;;  %v601_v31 = vsel %vm552_vm2, %v1375_v30, 0.0 }
 0x1bd   :  { %602 = vadd.xlane.f32.xlu0 %v601_v31 }
 0x1c1   :  { %v573_v33 = vpop.xlane.xlu1 %572 }
 0x1c2   :  { %v583_v34 = vsub.f32 %v548_v9, %v573_v33 }
 0x1c4   :  { %v597_v36 = vmul.f32 1.442695, %v583_v34 }
 0x1c6   :  { %1376 = vpow2.f32 %v597_v36 }
 0x1c7   :  { %1378 = vpow2.f32 %v587_v37  ;;  %v779_v37 = vld [vmem:[%s1737_s4 + $0x8] sm:$0xf] }
 0x1c8   :  { %v841_v38 = vsel %vm789_vm3, %v779_v37, 0 }
 0x1c9   :  { %v576_v39 = vpop.xlane.xlu1 %575  ;;  %850 = vmatpush.bf16.msra.mxu2 %v841_v38 }
 0x1ca   :  { %v584_v40 = vsub.f32 %v550_v12, %v576_v39 }
 0x1cc   :  { %v1377_v41 = vpop.eup %1376  ;;  %v599_v43 = vmul.f32 1.442695, %v584_v40  ;;  %v777_v40 = vld [vmem:[%s1737_s4] sm:$0xf] }
 0x1cd   :  { %v619_v44 = vsel %vm552_vm2, %v1377_v41, 0.0  ;;  %v1379_v47 = vpop.eup %1378 }
 0x1ce   :  { %1380 = vpow2.f32 %v599_v43  ;;  %620 = vadd.xlane.f32.xlu1 %v619_v44  ;;  %v604_v52 = vsel %vm552_vm2, %v1379_v47, 0.0 }
 0x1cf   :  { %1382 = vpow2.f32 %v589_v45 }
 0x1d1   :  { %v564_v46 = vpop.xlane.xlu1 %563 }
 0x1d2   :  { %v580_v48 = vsub.f32 %v490_v15, %v564_v46 }
 0x1d4   :  { %v1381_v49 = vpop.eup %1380  ;;  %v591_v50 = vmul.f32 1.442695, %v580_v48 }
 0x1d5   :  { %v622_v51 = vsel %vm552_vm2, %v1381_v49, 0.0  ;;  %v1383_v53 = vpop.eup %1382 }
 0x1d6   :  { %1384 = vpow2.f32 %v591_v50  ;;  %623 = vadd.xlane.f32.xlu2 %v622_v51  ;;  %605 = vadd.xlane.f32.xlu1 %v604_v52  ;;  %v607_v55 = vsel %vm552_vm2, %v1383_v53, 0.0  ;;  %v778_v50 = vld [vmem:[%s1737_s4 + $0x4] sm:$0xf] }
 0x1d7   :  { %v816_v51 = vsel %vm789_vm3, %v778_v50, 0 }
 0x1d8   :  { %825 = vmatpush.bf16.msrb.mxu1 %v816_v51 }
 0x1dc   :  { %v1385_v54 = vpop.eup %1384 }
 0x1dd   :  { %v610_v56 = vsel %vm552_vm2, %v1385_v54, 0.0 }
 0x1de   :  { %608 = vadd.xlane.f32.xlu2 %v607_v55  ;;  %611 = vadd.xlane.f32.xlu0 %v610_v56 }
 0x220   :  { %v615_v57 = vpop.xlane.xlu2 %614 }
 0x221   :  { %1386 = vrcp.f32 %v615_v57 }
 0x227   :  { %v1387_v59 = vpop.eup %1386 }
 0x228   :  { %v618_v58 = vpop.xlane.xlu0 %617  ;;  %v637_v60 = vmul.f32 %v1387_v59, %v1371_v23 }
 0x229   :  { %1388 = vrcp.f32 %v618_v58 }
 0x22a   :  { %v645_v62 = vpack.c.bf16 %v637_v60, %v637_v60 }
 0x22c   :  { %v715_v1 = vunpack.c.l.b16 %v645_v62 }
 0x22f   :  { %v1389_v61 = vpop.eup %1388 }
 0x230   :  { %v638_v63 = vmul.f32 %v1389_v61, %v1373_v28  ;;  %v603_v4 = vpop.xlane.xlu0 %602 }
 0x231   :  { %1390 = vrcp.f32 %v603_v4 }
 0x232   :  { %v646_v0 = vpack.c.bf16 %v638_v63, %v638_v63 }
 0x234   :  { %v716_v2 = vunpack.c.l.b16 %v646_v0 }
 0x236   :  { %v717_v3 = vpack.c.b16 %v716_v2, %v715_v1 }
 0x237   :  { %v1391_v8 = vpop.eup %1390 }
 0x238   :  { %1271 = vmatmul.msk.bf16.vlgmr.msrb.gmra.mxu2 %vm552_vm2, %v717_v3  ;;  %v633_v10 = vmul.f32 %v1391_v8, %v1375_v30 }
 0x23a   :  { %v641_v14 = vpack.c.bf16 %v633_v10, %v633_v10  ;;  %v1356_v10 = vld [vmem:[%s1740_s7 + $0x14] sm:$0xf0] }
 0x23c   :  { %v659_v22 = vunpack.c.l.b16 %v641_v14 }
 0x241   :  { %v621_v5 = vpop.xlane.xlu1 %620 }
 0x242   :  { %1392 = vrcp.f32 %v621_v5 }
 0x248   :  { %v1393_v9 = vpop.eup %1392 }
 0x249   :  { %v606_v6 = vpop.xlane.xlu1 %605  ;;  %v624_v7 = vpop.xlane.xlu2 %623  ;;  %v639_v11 = vmul.f32 %v1393_v9, %v1377_v41  ;;  %v791_v41 = vsel %vm789_vm3, %v777_v40, 0  ;;  %v1287_v9 = vld [vmem:[%s1740_s7 + $0x10] sm:$0xf] }
 0x24a   :  { %1394 = vrcp.f32 %v606_v6  ;;  %800 = vmatpush.bf16.msrb.mxu0 %v791_v41 }
 0x24b   :  { %1396 = vrcp.f32 %v624_v7  ;;  %v647_v18 = vpack.c.bf16 %v639_v11, %v639_v11  ;;  %v1355_v11 = vld [vmem:[%s1740_s7 + $0x14] sm:$0xf] }
 0x24d   :  { %v743_v24 = vunpack.c.l.b16 %v647_v18 }
 0x250   :  { %v1395_v12 = vpop.eup %1394 }
 0x251   :  { %v1397_v13 = vpop.eup %1396  ;;  %v634_v15 = vmul.f32 %v1395_v12, %v1379_v47  ;;  %v612_v16 = vpop.xlane.xlu0 %611  ;;  %v780_v47 = vld [vmem:[%s1737_s4 + $0xc] sm:$0xf]  ;;  %v1288_v12 = vor.u32 %v1356_v10, %v1287_v9 }
 0x252   :  { %v609_v17 = vpop.xlane.xlu2 %608  ;;  %v640_v19 = vmul.f32 %v1397_v13, %v1381_v49  ;;  %1398 = vrcp.f32 %v612_v16  ;;  %v866_v48 = vsel %vm789_vm3, %v780_v47, 0  ;;  %v1289_v13 = vld [vmem:[%s1740_s7 + $0x18] sm:$0xf0]  ;;  %v1354_v16 = vld [vmem:[%s1740_s7 + $0x4] sm:$0xf0] }
 0x253   :  { %v642_v20 = vpack.c.bf16 %v634_v15, %v634_v15  ;;  %1400 = vrcp.f32 %v609_v17  ;;  %875 = vmatpush.bf16.msra.mxu3 %v866_v48  ;;  %v1292_v14 = vor.u32 %v1355_v11, %v1289_v13  ;;  %v1279_v15 = vld [vmem:[%s1740_s7] sm:$0xf]  ;;  %v1353_v17 = vld [vmem:[%s1740_s7 + $0x4] sm:$0xf]  ;;  %v1360_v11 = vld [vmem:[%s1742_s9 + $0x18] sm:$0xff] }
 0x254   :  { %v648_v21 = vpack.c.bf16 %v640_v19, %v640_v19  ;;  %v1280_v18 = vor.u32 %v1354_v16, %v1279_v15  ;;  %v1281_v19 = vld [vmem:[%s1740_s7 + $0x8] sm:$0xf0]  ;;  %v1679_v47 = vld [vmem:[%s1741_s8] sm:$0x3] }
 0x255   :  { %v660_v23 = vunpack.c.l.b16 %v642_v20  ;;  %v1284_v20 = vor.u32 %v1353_v17, %v1281_v19  ;;  %v910_v48 = vperm.slane %v1679_v47, 1  ;;  %v1359_v19 = vld [vmem:[%s1742_s9 + $0x10] sm:$0xff] }
 0x256   :  { %v744_v25 = vunpack.c.l.b16 %v648_v21 }
 0x257   :  { %v661_v26 = vpack.c.b16 %v660_v23, %v659_v22 }
 0x258   :  { %v1399_v27 = vpop.eup %1398  ;;  %v745_v28 = vpack.c.b16 %v744_v25, %v743_v24 }
 0x259   :  { %v1401_v29 = vpop.eup %1400  ;;  %v636_v30 = vmul.f32 %v1399_v27, %v1385_v54  ;;  %1269 = vmatmul.msk.bf16.vlgmr.msra.gmra.mxu0 %vm552_vm2, %v661_v26 }
 0x25a   :  { %v635_v31 = vmul.f32 %v1401_v29, %v1383_v53  ;;  %1272 = vmatmul.msk.bf16.vlgmr.msrb.gmra.mxu3 %vm552_vm2, %v745_v28  ;;  %942 = vmatpush.bf16.msra.mxu0 %v1288_v12 }
 0x25b   :  { %v644_v32 = vpack.c.bf16 %v636_v30, %v636_v30 }
 0x25c   :  { %v643_v33 = vpack.c.bf16 %v635_v31, %v635_v31 }
 0x25d   :  { %v688_v34 = vunpack.c.l.b16 %v644_v32 }
 0x25e   :  { %v687_v35 = vunpack.c.l.b16 %v643_v33  ;;  %943 = vmatpush.bf16.msra.mxu0 %v1280_v18 }
 0x260   :  { %v689_v36 = vpack.c.b16 %v688_v34, %v687_v35 }
 0x262   :  { %1270 = vmatmul.msk.bf16.vlgmr.msra.gmra.mxu1 %vm552_vm2, %v689_v36 }
 0x263   :  { %956 = vmatpush.bf16.msra.mxu1 %v1292_v14 }
 0x267   :  { %957 = vmatpush.bf16.msra.mxu1 %v1284_v20 }
 0x2bb   :  { %v736_v39 = vpop.f32.mrf.mxu2 }
 0x2bc   :  { %v773_v42 = vpack.c.bf16 %v736_v39, %v736_v39  ;;  %v1368_v39 = vld [vmem:[%s1738_s5] ss:$0 sm:$0xff] }
 0x2be   :  { %v834_v45 = vunpack.c.l.b16 %v773_v42 }
 0x2c3   :  { %v738_v43 = vpop.f32.mrf.mxu2 }
 0x2c4   :  { %v774_v44 = vpack.c.bf16 %v738_v43, %v738_v43 }
 0x2c6   :  { %v835_v46 = vunpack.c.l.b16 %v774_v44 }
 0x2c8   :  { %v836_v49 = vpack.c.b16 %v835_v46, %v834_v45 }
 0x2ca   :  { %1275 = vmatmul.msk.bf16.vlgmr.msra.gmra.mxu2 %vm441_vm1, %v836_v49 }
 0x2d6   :  { %v680_v52 = vpop.f32.mrf.mxu0 }
 0x2d7   :  { %v769_v53 = vpack.c.bf16 %v680_v52, %v680_v52  ;;  %v1364_v52 = vld [vmem:[%s1742_s9 + $0x38] sm:$0xff] }
 0x2d8   :  { %1123 = vmatpush.bf16.msrb.mxu2 %v1364_v52 }
 0x2d9   :  { %v783_v58 = vunpack.c.l.b16 %v769_v53 }
 0x2dd   :  { %v764_v54 = vpop.f32.mrf.mxu3 }
 0x2de   :  { %v682_v55 = vpop.f32.mrf.mxu0  ;;  %v775_v61 = vpack.c.bf16 %v764_v54, %v764_v54 }
 0x2df   :  { %v770_v56 = vpack.c.bf16 %v682_v55, %v682_v55  ;;  %v708_v57 = vpop.f32.mrf.mxu1  ;;  %v1363_v55 = vld [vmem:[%s1742_s9 + $0x30] sm:$0xff] }
 0x2e0   :  { %v771_v63 = vpack.c.bf16 %v708_v57, %v708_v57  ;;  %v859_v2 = vunpack.c.l.b16 %v775_v61  ;;  %1124 = vmatpush.bf16.msrb.mxu2 %v1363_v55 }
 0x2e1   :  { %v784_v59 = vunpack.c.l.b16 %v770_v56 }
 0x2e2   :  { %v809_v5 = vunpack.c.l.b16 %v771_v63 }
 0x2e3   :  { %v785_v60 = vpack.c.b16 %v784_v59, %v783_v58 }
 0x2e5   :  { %v766_v62 = vpop.f32.mrf.mxu3  ;;  %1273 = vmatmul.msk.bf16.vlgmr.msrb.gmra.mxu0 %vm441_vm1, %v785_v60 }
 0x2e6   :  { %v776_v0 = vpack.c.bf16 %v766_v62, %v766_v62  ;;  %v1362_v62 = vld [vmem:[%s1742_s9 + $0x28] sm:$0xff] }
 0x2e7   :  { %v710_v1 = vpop.f32.mrf.mxu1  ;;  %1125 = vmatpush.bf16.msrb.mxu2 %v1362_v62 }
 0x2e8   :  { %v860_v3 = vunpack.c.l.b16 %v776_v0  ;;  %v772_v4 = vpack.c.bf16 %v710_v1, %v710_v1 }
 0x2ea   :  { %v861_v6 = vpack.c.b16 %v860_v3, %v859_v2  ;;  %v810_v7 = vunpack.c.l.b16 %v772_v4  ;;  %v1361_v4 = vld [vmem:[%s1742_s9 + $0x20] sm:$0xff] }
 0x2eb   :  { %1126 = vmatpush.bf16.msrb.mxu2 %v1361_v4 }
 0x2ec   :  { %v811_v8 = vpack.c.b16 %v810_v7, %v809_v5  ;;  %1276 = vmatmul.msk.bf16.vlgmr.msra.gmra.mxu3 %vm441_vm1, %v861_v6 }
 0x2ee   :  { %1274 = vmatmul.msk.bf16.vlgmr.msrb.gmra.mxu1 %vm441_vm1, %v811_v8 }
 0x2ef   :  { %1127 = vmatpush.bf16.msrb.mxu2 %v1360_v11 }
 0x2f3   :  { %1128 = vmatpush.bf16.msrb.mxu2 %v1359_v19 }
 0x34d   :  { %v852_v22 = vpop.f32.mrf.mxu2 }
 0x34e   :  { %v885_v29 = vsel %vm77_vm0, %v852_v22, 0.0 }
 0x355   :  { %v854_v30 = vpop.f32.mrf.mxu2 }
 0x356   :  { %v892_v37 = vsel %vm77_vm0, %v854_v30, 0.0 }
 0x362   :  { %v802_v21 = vpop.f32.mrf.mxu0 }
 0x363   :  { %v882_v25 = vsel %vm77_vm0, %v802_v21, 0.0 }
 0x36a   :  { %v804_v28 = vpop.f32.mrf.mxu0 }
 0x36b   :  { %v827_v23 = vpop.f32.mrf.mxu1  ;;  %v889_v33 = vsel %vm77_vm0, %v804_v28, 0.0 }
 0x36c   :  { %v883_v24 = vsel %vm77_vm0, %v827_v23, 0.0 }
 0x36d   :  { %v884_v26 = vadd.f32 %v883_v24, %v882_v25 }
 0x36f   :  { %v877_v27 = vpop.f32.mrf.mxu3  ;;  %v886_v31 = vadd.f32 %v885_v29, %v884_v26  ;;  %v1358_v26 = vld [vmem:[%s1742_s9 + $0x8] sm:$0xff] }
 0x370   :  { %v887_v34 = vsel %vm77_vm0, %v877_v27, 0.0  ;;  %1129 = vmatpush.bf16.msrb.mxu2 %v1358_v26 }
 0x371   :  { %v888_v38 = vadd.f32 %v887_v34, %v886_v31  ;;  %v1357_v31 = vld [vmem:[%s1742_s9] sm:$0xff] }
 0x373   :  { %v829_v32 = vpop.f32.mrf.mxu1  ;;  %v900_v44 = vadd.f32 %v1368_v39, %v888_v38 }
 0x374   :  { %v890_v35 = vsel %vm77_vm0, %v829_v32, 0.0  ;;  %1130 = vmatpush.bf16.msrb.mxu2 %v1357_v31 }
 0x375   :  { %v891_v36 = vadd.f32 %v890_v35, %v889_v33 }
 0x377   :  { %v879_v40 = vpop.f32.mrf.mxu3  ;;  %v893_v41 = vadd.f32 %v892_v37, %v891_v36 }
 0x378   :  { %v894_v42 = vsel %vm77_vm0, %v879_v40, 0.0 }
 0x379   :  { %v895_v43 = vadd.f32 %v894_v42, %v893_v41 }
 0x37b   :  { %v901_v45 = vadd.f32 %v1368_v39, %v895_v43 }
 0x37d   :  { %v902_v46 = vpack.c.bf16 %v901_v45, %v900_v44 }
 0x37f   :  { %1293 = vmatmul.msk.bf16.vlgmr.msra.gmra.mxu0 %vm77_vm0, %v902_v46  ;;  %1294 = vmatmul.msk.bf16.vlgmr.msra.gmra.mxu1 %vm77_vm0, %v902_v46 }
 0x3fc   :  { %v959_v49 = vpop.f32.mrf.mxu1 }
 0x3fd   :  { %v1682_v50 = vadd.f32 %v959_v49, %v910_v48 }
 0x3ff   :  { %v1685_v51 = vmul.f32 0.70710677, %v1682_v50  ;;  %v964_v11 = vmul.f32 0.5, %v1682_v50 }
 0x401   :  { %v968_v53 = vmul.f32 %v1685_v51, %v1685_v51 }
 0x403   :  { %v969_v54 = vmin.f32 %v968_v53, 16.0 }
 0x404   :  { %v961_v56 = vpop.f32.mrf.mxu1 }
 0x405   :  { %v970_v57 = vmul.f32 2.1237322e-06, %v969_v54  ;;  %v981_v58 = vmul.f32 3.8918573e-05, %v969_v54  ;;  %v1695_v59 = vadd.f32 %v961_v56, %v910_v48 }
 0x407   :  { %v971_v60 = vadd.f32 0.00028619796, %v970_v57  ;;  %v982_v61 = vadd.f32 0.001143296, %v981_v58  ;;  %v1701_v63 = vmul.f32 0.70710677, %v1695_v59 }
 0x409   :  { %v972_v0 = vmul.f32 %v971_v60, %v969_v54  ;;  %v983_v1 = vmul.f32 %v982_v61, %v969_v54  ;;  %v1008_v2 = vmul.f32 %v1701_v63, %v1701_v63  ;;  %v945_v61 = vpop.f32.mrf.mxu0 }
 0x40b   :  { %v984_v3 = vadd.f32 0.014752088, %v983_v1  ;;  %v1009_v5 = vmin.f32 %v1008_v2, 16.0  ;;  %v973_v6 = vadd.f32 0.0036580483, %v972_v0 }
 0x40d   :  { %v985_v7 = vmul.f32 %v984_v3, %v969_v54  ;;  %v1010_v8 = vmul.f32 2.1237322e-06, %v1009_v5  ;;  %v1021_v9 = vmul.f32 3.8918573e-05, %v1009_v5  ;;  %v974_v14 = vmul.f32 %v973_v6, %v969_v54 }
 0x40f   :  { %v986_v10 = vadd.f32 0.112945676, %v985_v7  ;;  %v1011_v12 = vadd.f32 0.00028619796, %v1010_v8  ;;  %v1022_v13 = vadd.f32 0.001143296, %v1021_v9 }
 0x410   :  { %v975_v21 = vadd.f32 0.05243302, %v974_v14 }
 0x411   :  { %v987_v15 = vmul.f32 %v986_v10, %v969_v54  ;;  %v1012_v16 = vmul.f32 %v1011_v12, %v1009_v5  ;;  %v1023_v17 = vmul.f32 %v1022_v13, %v1009_v5  ;;  %v909_v10 = vperm.slane %v1679_v47, 0  ;;  %v947_v13 = vpop.f32.mrf.mxu0 }
 0x412   :  { %v976_v28 = vmul.f32 %v975_v21, %v969_v54 }
 0x413   :  { %v988_v18 = vadd.f32 0.4994258, %v987_v15  ;;  %v1024_v20 = vadd.f32 0.014752088, %v1023_v17  ;;  %v1013_v23 = vadd.f32 0.0036580483, %v1012_v16  ;;  %v946_v17 = vadd.f32 %v945_v61, %v909_v10 }
 0x414   :  { %v977_v33 = vadd.f32 0.18741608, %v976_v28  ;;  %v965_v15 = vmul.f32 0.5, %v1695_v59 }
 0x415   :  { %v989_v22 = vmul.f32 %v988_v18, %v969_v54  ;;  %v1025_v24 = vmul.f32 %v1024_v20, %v1009_v5  ;;  %v1014_v29 = vmul.f32 %v1013_v23, %v1009_v5  ;;  %v948_v18 = vadd.f32 %v947_v13, %v909_v10 }
 0x416   :  { %v978_v39 = vmul.f32 %v977_v33, %v969_v54 }
 0x417   :  { %v990_v25 = vadd.f32 1.0, %v989_v22  ;;  %v1026_v27 = vadd.f32 0.112945676, %v1025_v24  ;;  %v1015_v34 = vadd.f32 0.05243302, %v1014_v29 }
 0x418   :  { %v979_v45 = vadd.f32 1.1283791, %v978_v39  ;;  %v1369_v22 = vld [vmem:[%s1743_s10] ss:$0 sm:$0xff] }
 0x419   :  { %1402 = vrcp.f32 %v990_v25  ;;  %v1027_v30 = vmul.f32 %v1026_v27, %v1009_v5  ;;  %v1016_v40 = vmul.f32 %v1015_v34, %v1009_v5  ;;  %v1002_v42 = vand.u32 2147483648, %v990_v25 }
 0x41a   :  { %v1000_v44 = vand.u32 2147483647, %v990_v25  ;;  %vm996_vm5 = vweird.f32 %v990_v25  ;;  %v980_v55 = vmul.f32 %v979_v45, %v1685_v51 }
 0x41b   :  { %v1028_v32 = vadd.f32 0.4994258, %v1027_v30  ;;  %v1017_v46 = vadd.f32 0.18741608, %v1016_v40  ;;  %v1003_v49 = vor.u32 1.1754944e-38, %v1002_v42 }
 0x41c   :  { %vm1001_vm7 = vcmp.eq.f32.partialorder %v1000_v44, 8.507059e+37 }
 0x41d   :  { %v1029_v35 = vmul.f32 %v1028_v32, %v1009_v5  ;;  %v1018_v54 = vmul.f32 %v1017_v46, %v1009_v5 }
 0x41f   :  { %v1403_v36 = vpop.eup %1402  ;;  %v1030_v38 = vadd.f32 1.0, %v1029_v35  ;;  %v1019_v0 = vadd.f32 1.1283791, %v1018_v54 }
 0x420   :  { %v992_v37 = vmul.f32 %v1403_v36, %v990_v25  ;;  %vm997_vm4 = vweird.f32 %v1403_v36 }
 0x421   :  { %1404 = vrcp.f32 %v1030_v38  ;;  %vm998_vm6 = vmor %vm996_vm5, %vm997_vm4  ;;  %v1042_v62 = vand.u32 2147483648, %v1030_v38  ;;  %v1040_v2 = vand.u32 2147483647, %v1030_v38  ;;  %vm1036_vm9 = vweird.f32 %v1030_v38 }
 0x422   :  { %v993_v41 = vsub.f32 1.0, %v992_v37  ;;  %v1020_v7 = vmul.f32 %v1019_v0, %v1701_v63 }
 0x423   :  { %v1043_v6 = vor.u32 1.1754944e-38, %v1042_v62  ;;  %vm1041_vm11 = vcmp.eq.f32.partialorder %v1040_v2, 8.507059e+37 }
 0x424   :  { %v994_v43 = vmul.f32 %v1403_v36, %v993_v41 }
 0x426   :  { %v995_v48 = vadd.f32 %v1403_v36, %v994_v43 }
 0x427   :  { %v1405_v52 = vpop.eup %1404 }
 0x428   :  { %v999_v53 = vsel %vm998_vm6, %v1403_v36, %v995_v48  ;;  %v1032_v57 = vmul.f32 %v1405_v52, %v1030_v38  ;;  %vm1037_vm8 = vweird.f32 %v1405_v52 }
 0x429   :  { %v1004_v56 = vsel %vm1001_vm7, %v1003_v49, %v999_v53  ;;  %vm1038_vm10 = vmor %vm1036_vm9, %vm1037_vm8 }
 0x42a   :  { %v1005_v58 = vmul.f32 %v1004_v56, %v980_v55  ;;  %v1033_v60 = vsub.f32 1.0, %v1032_v57 }
 0x42c   :  { %v1034_v1 = vmul.f32 %v1405_v52, %v1033_v60  ;;  %v1295_v3 = vclamps-f32 %v1005_v58, 1.0 }
 0x42e   :  { %v1035_v4 = vadd.f32 %v1405_v52, %v1034_v1  ;;  %v1048_v5 = vadd.f32 1.0, %v1295_v3 }
 0x430   :  { %v1039_v8 = vsel %vm1038_vm10, %v1405_v52, %v1035_v4  ;;  %v1050_v14 = vmul.f32 %v1048_v5, %v964_v11 }
 0x431   :  { %v1044_v51 = vsel %vm1041_vm11, %v1043_v6, %v1039_v8 }
 0x432   :  { %v1045_v9 = vmul.f32 %v1044_v51, %v1020_v7  ;;  %v1052_v20 = vmul.f32 %v1050_v14, %v946_v17 }
 0x434   :  { %v1296_v12 = vclamps-f32 %v1045_v9, 1.0 }
 0x436   :  { %v1049_v16 = vadd.f32 1.0, %v1296_v12 }
 0x438   :  { %v1051_v19 = vmul.f32 %v1049_v16, %v965_v15 }
 0x43a   :  { %v1053_v63 = vmul.f32 %v1051_v19, %v948_v18 }
 0x43c   :  { %v1054_v21 = vpack.c.bf16 %v1053_v63, %v1052_v20 }
 0x43e   :  { %1131 = vmatmul.bf16.vlgmr.msrb.gmra.mxu2 %v1054_v21 }
 0x4c1   :  { %v1132_v47 = vpop.f32.mrf.mxu2 }
 0x4c2   :  { %v1133_v23 = vadd.f32 %v1369_v22, %v1132_v47 }
 0x4c4   :  { %1137 = vst.msk [vmem:[#allocation2] sm:$0xff] %vm77_vm0, %v1133_v23 }
 0x4c9   :  { %v1134_v50 = vpop.f32.mrf.mxu2 }
 0x4ca   :  { %v1135_v59 = vadd.f32 %v1369_v22, %v1134_v50 }
 0x4cc   :  { %1138 = vst.msk [vmem:[#allocation2 + $0x8] sm:$0xff] %vm77_vm0, %v1135_v59 }
 0x4cd   :  { %1151 = dma.vmem_to_hbm [thread:$0]  %s1144_s24, 256, %s1146_s3, [#allocation3], %s1433_s27, %s1433_s27, %s1434_s28  }
 0x4ce   :  { %1430 = dma.done.wait [#allocation3], 256  }
 0x4cf   :  { %1431 = vsyncadd [#allocation3], 4294967040 }
 0x4d0   :  { %1156 = vsyncpa [#allocation3], 1 }

</bundles_post_ra>
